<compile_context>
chip_gen: v6e
topology: v6e:2x2x1
jax: 0.10.0
libtpu: 0.0.40
codegen_flags: <defaults>
</compile_context>

<pallas_src>
import jax
import jax.numpy as jnp
from jax.experimental import pallas as pl
from jax.experimental.pallas import tpu as pltpu


IMG_DIM = 28 * 28          # 784
NEG_SLOPE = 0.01           # PyTorch nn.LeakyReLU default negative_slope


def _round_up(x, m):
    return (x + m - 1) // m * m


def _leaky_relu(x):
    return jnp.where(x >= 0, x, NEG_SLOPE * x)


def autoencoder_fc_kernel(
    x_ref,       # (TB, 784)  f32
    e1w_ref,     # (784, H)   bf16
    e2w_ref,     # (H, H)     bf16
    ezw_ref,     # (H, L)     bf16
    d1w_ref,     # (L, H)     bf16
    d2w_ref,     # (H, H)     bf16
    d3w_ref,     # (H, 784)   bf16
    b_ref,       # (8, BW)    f32  (row j = bias of layer j, zero-padded)
    out_ref,     # (TB, 784)  f32
):
    H = e2w_ref.shape[0]
    L = ezw_ref.shape[1]
    b = b_ref[...]

    def linear(h_bf16, w_ref, row, n):
        acc = jnp.dot(h_bf16, w_ref[...], preferred_element_type=jnp.float32)
        return acc + b[row:row + 1, :n]

    x = x_ref[...].astype(jnp.bfloat16)

    # --- encoder ---
    h = _leaky_relu(linear(x, e1w_ref, 0, H)).astype(jnp.bfloat16)
    h = _leaky_relu(linear(h, e2w_ref, 1, H)).astype(jnp.bfloat16)
    z = linear(h, ezw_ref, 2, L).astype(jnp.bfloat16)

    # --- decoder ---
    h = _leaky_relu(linear(z, d1w_ref, 3, H)).astype(jnp.bfloat16)
    h = _leaky_relu(linear(h, d2w_ref, 4, H)).astype(jnp.bfloat16)
    y = linear(h, d3w_ref, 5, IMG_DIM)

    out_ref[...] = jax.nn.sigmoid(y).astype(out_ref.dtype)


def autoencoder_fc_forward(x, params):
    """x: (B, 1, 28, 28) float32.  Returns y_hat: (B, 1, 28, 28) float32."""
    B = x.shape[0]
    x_flat = x.reshape(B, IMG_DIM)

    (e1w, e1b), (e2w, e2b), (ezw, ezb), (d1w, d1b), (d2w, d2b), (d3w, d3b) = params
    H = e1w.shape[1]
    L = ezw.shape[1]

    # Batch tiling: full batch in one tile when it fits (no padding at all);
    # otherwise 1024-row tiles (multiple of 8) with batch padded to a multiple.
    MAX_TB = 1024
    if B <= MAX_TB:
        TB, B_pad = B, B
    else:
        TB = MAX_TB
        B_pad = _round_up(B, TB)
        x_flat = jnp.pad(x_flat, ((0, B_pad - B), (0, 0)))
    grid = (B_pad // TB,)

    # bf16 weights (MXU-native, half the resident-weight DMA).
    weights = [
        e1w.astype(jnp.bfloat16), e2w.astype(jnp.bfloat16), ezw.astype(jnp.bfloat16),
        d1w.astype(jnp.bfloat16), d2w.astype(jnp.bfloat16), d3w.astype(jnp.bfloat16),
    ]

    # Pack all six biases into one (8, BW) f32 operand: one DMA instead of six.
    BW = max(IMG_DIM, H, L)
    b_all = jnp.zeros((8, BW), jnp.float32)
    b_all = b_all.at[0, :H].set(e1b)
    b_all = b_all.at[1, :H].set(e2b)
    b_all = b_all.at[2, :L].set(ezb)
    b_all = b_all.at[3, :H].set(d1b)
    b_all = b_all.at[4, :H].set(d2b)
    b_all = b_all.at[5, :IMG_DIM].set(d3b)

    def const_spec(a):
        return pl.BlockSpec(a.shape, lambda i: (0, 0))

    in_specs = [pl.BlockSpec((TB, IMG_DIM), lambda i: (i, 0))]          # x: tiled
    in_specs += [const_spec(w) for w in weights]                        # weights: resident
    in_specs += [const_spec(b_all)]                                     # biases: resident
    out_spec = pl.BlockSpec((TB, IMG_DIM), lambda i: (i, 0))            # out: tiled

    # Advisory cost estimate so XLA schedules around this short kernel sanely.
    flops = 2 * B_pad * (IMG_DIM * H + H * H + H * L + L * H + H * H + H * IMG_DIM)
    w_bytes = sum(int(w.size) * 2 for w in weights) + int(b_all.size) * 4
    bytes_accessed = 2 * B_pad * IMG_DIM * 4 + w_bytes                  # x read + out write
    cost = pl.CostEstimate(
        flops=int(flops),
        transcendentals=int(B_pad * IMG_DIM),      # sigmoid exp
        bytes_accessed=int(bytes_accessed),
    )

    # VMEM budget: double-buffered x + out tiles (f32) plus resident weights,
    # with headroom; capped below v7x's 64 MiB physical VMEM per TensorCore.
    tile_bytes = 2 * (TB * IMG_DIM * 4) + 2 * (TB * IMG_DIM * 4)
    vmem_limit = int(min(60 * 1024 * 1024,
                         max(32 * 1024 * 1024,
                             2 * (tile_bytes + w_bytes) + (4 << 20))))

    y = pl.pallas_call(
        autoencoder_fc_kernel,
        out_shape=jax.ShapeDtypeStruct((B_pad, IMG_DIM), jnp.float32),
        grid=grid,
        in_specs=in_specs,
        out_specs=out_spec,
        compiler_params=pltpu.CompilerParams(
            dimension_semantics=("parallel",),
            vmem_limit_bytes=vmem_limit,
        ),
        cost_estimate=cost,
    )(x_flat, *weights, b_all)

    if B_pad != B:
        y = y[:B]
    return y.reshape(B, 1, 28, 28)


def autoencoder_fc_reference(x, params):
    """Pure-JAX f32 reference of the PyTorch forward pass (for validation)."""
    B = x.shape[0]
    h = x.reshape(B, IMG_DIM)
    (e1w, e1b), (e2w, e2b), (ezw, ezb), (d1w, d1b), (d2w, d2b), (d3w, d3b) = params
    h = _leaky_relu(h @ e1w + e1b)
    h = _leaky_relu(h @ e2w + e2b)
    z = h @ ezw + ezb
    h = _leaky_relu(z @ d1w + d1b)
    h = _leaky_relu(h @ d2w + d2b)
    y = jax.nn.sigmoid(h @ d3w + d3b)
    return y.reshape(B, 1, 28, 28)


def init_params(key, hidden_dim, latent_dim):
    """Deterministic init; Linear weights stored as (in, out), PyTorch-style range."""
    dims = [
        (IMG_DIM, hidden_dim),     # encoder_1
        (hidden_dim, hidden_dim),  # encoder_2
        (hidden_dim, latent_dim),  # encoder_z
        (latent_dim, hidden_dim),  # decoder_1
        (hidden_dim, hidden_dim),  # decoder_2
        (hidden_dim, IMG_DIM),     # decoder_3
    ]
    params = []
    for (fan_in, fan_out) in dims:
        key, kw, kb = jax.random.split(key, 3)
        bound = 1.0 / jnp.sqrt(fan_in)
        w = jax.random.uniform(kw, (fan_in, fan_out), jnp.float32, -bound, bound)
        b = jax.random.uniform(kb, (fan_out,), jnp.float32, -bound, bound)
        params.append((w, b))
    return params


if __name__ == "__main__":
    B, HIDDEN, LATENT = 2, 32, 8
    key = jax.random.PRNGKey(0)
    key, kx = jax.random.split(key)

    x = jax.random.uniform(kx, (B, 1, 28, 28), jnp.float32)  # image-like input in [0,1)
    params = init_params(key, HIDDEN, LATENT)

    y_hat = autoencoder_fc_forward(x, params)
    jax.block_until_ready(y_hat)

    assert y_hat.shape == (B, 1, 28, 28)
    assert bool(jnp.all((y_hat >= 0.0) & (y_hat <= 1.0)))    # sigmoid output range

    # Validate against the f32 reference (bf16 matmul inputs => loose tolerance).
    y_ref = autoencoder_fc_reference(x, params)
    max_err = float(jnp.max(jnp.abs(y_hat - y_ref)))
    assert max_err < 5e-2, f"max abs error vs reference: {max_err}"

    print("KERNEL_OK")
</pallas_src>

<mosaic_0001>
module attributes {stable_mosaic.version = 11 : i64} {
  func.func @autoencoder_fc_kernel(%arg0: i32, %arg1: memref<2x784xf32, #tpu.memory_space<vmem>>, %arg2: memref<784x32xbf16, #tpu.memory_space<vmem>>, %arg3: memref<32x32xbf16, #tpu.memory_space<vmem>>, %arg4: memref<32x8xbf16, #tpu.memory_space<vmem>>, %arg5: memref<8x32xbf16, #tpu.memory_space<vmem>>, %arg6: memref<32x32xbf16, #tpu.memory_space<vmem>>, %arg7: memref<32x784xbf16, #tpu.memory_space<vmem>>, %arg8: memref<8x784xf32, #tpu.memory_space<vmem>>, %arg9: memref<2x784xf32, #tpu.memory_space<vmem>>) attributes {dimension_semantics = [#tpu.dimension_semantics<parallel>], iteration_bounds = array<i64: 1>, scalar_prefetch = 0 : i64, scratch_operands = 0 : i64, tpu.core_type = #tpu.core_type<tc>, window_params = [{transform_indices = @transform_0, window_bounds = array<i64: 2, 784>}, {pipeline_mode = #tpu.pipeline_mode<synchronous>, transform_indices = @transform_1, window_bounds = array<i64: 784, 32>}, {pipeline_mode = #tpu.pipeline_mode<synchronous>, transform_indices = @transform_2, window_bounds = array<i64: 32, 32>}, {pipeline_mode = #tpu.pipeline_mode<synchronous>, transform_indices = @transform_3, window_bounds = array<i64: 32, 8>}, {pipeline_mode = #tpu.pipeline_mode<synchronous>, transform_indices = @transform_4, window_bounds = array<i64: 8, 32>}, {pipeline_mode = #tpu.pipeline_mode<synchronous>, transform_indices = @transform_5, window_bounds = array<i64: 32, 32>}, {pipeline_mode = #tpu.pipeline_mode<synchronous>, transform_indices = @transform_6, window_bounds = array<i64: 32, 784>}, {pipeline_mode = #tpu.pipeline_mode<synchronous>, transform_indices = @transform_7, window_bounds = array<i64: 8, 784>}, {transform_indices = @transform_8, window_bounds = array<i64: 2, 784>}]} {
    %c0 = arith.constant 0 : index
    %c0_0 = arith.constant 0 : index
    %0 = vector.load %arg8[%c0, %c0_0] : memref<8x784xf32, #tpu.memory_space<vmem>>, vector<8x784xf32>
    %c0_1 = arith.constant 0 : index
    %c0_2 = arith.constant 0 : index
    %1 = vector.load %arg1[%c0_1, %c0_2] : memref<2x784xf32, #tpu.memory_space<vmem>>, vector<2x784xf32>
    %2 = arith.truncf %1 : vector<2x784xf32> to vector<2x784xbf16>
    %c0_3 = arith.constant 0 : index
    %c0_4 = arith.constant 0 : index
    %3 = vector.load %arg2[%c0_3, %c0_4] : memref<784x32xbf16, #tpu.memory_space<vmem>>, vector<784x32xbf16>
    %cst = arith.constant dense<0.000000e+00> : vector<2x32xf32>
    %4 = tpu.matmul %2, %3, %cst {dimension_numbers = #tpu.dot_dimension_numbers<[1], [0], [0], [1], [0, 0, 1, 1], [], []>} : vector<2x784xbf16>, vector<784x32xbf16>, vector<2x32xf32> -> vector<2x32xf32>
    %5 = vector.extract_strided_slice %0 {offsets = [0, 0], sizes = [1, 32], strides = [1, 1]} : vector<8x784xf32> to vector<1x32xf32>
    %6 = vector.broadcast %5 : vector<1x32xf32> to vector<2x32xf32>
    %7 = arith.addf %4, %6 : vector<2x32xf32>
    %cst_5 = arith.constant 0.000000e+00 : f32
    %8 = vector.broadcast %cst_5 : f32 to vector<2x32xf32>
    %9 = arith.cmpf oge, %7, %8 : vector<2x32xf32>
    %cst_6 = arith.constant 0.00999999977 : f32
    %10 = vector.broadcast %cst_6 : f32 to vector<2x32xf32>
    %11 = arith.mulf %10, %7 : vector<2x32xf32>
    %12 = arith.select %9, %7, %11 : vector<2x32xi1>, vector<2x32xf32>
    %13 = arith.truncf %12 : vector<2x32xf32> to vector<2x32xbf16>
    %c0_7 = arith.constant 0 : index
    %c0_8 = arith.constant 0 : index
    %14 = vector.load %arg3[%c0_7, %c0_8] : memref<32x32xbf16, #tpu.memory_space<vmem>>, vector<32x32xbf16>
    %cst_9 = arith.constant dense<0.000000e+00> : vector<2x32xf32>
    %15 = tpu.matmul %13, %14, %cst_9 {dimension_numbers = #tpu.dot_dimension_numbers<[1], [0], [0], [1], [0, 0, 1, 1], [], []>} : vector<2x32xbf16>, vector<32x32xbf16>, vector<2x32xf32> -> vector<2x32xf32>
    %16 = vector.extract_strided_slice %0 {offsets = [1, 0], sizes = [1, 32], strides = [1, 1]} : vector<8x784xf32> to vector<1x32xf32>
    %17 = vector.broadcast %16 : vector<1x32xf32> to vector<2x32xf32>
    %18 = arith.addf %15, %17 : vector<2x32xf32>
    %cst_10 = arith.constant 0.000000e+00 : f32
    %19 = vector.broadcast %cst_10 : f32 to vector<2x32xf32>
    %20 = arith.cmpf oge, %18, %19 : vector<2x32xf32>
    %cst_11 = arith.constant 0.00999999977 : f32
    %21 = vector.broadcast %cst_11 : f32 to vector<2x32xf32>
    %22 = arith.mulf %21, %18 : vector<2x32xf32>
    %23 = arith.select %20, %18, %22 : vector<2x32xi1>, vector<2x32xf32>
    %24 = arith.truncf %23 : vector<2x32xf32> to vector<2x32xbf16>
    %c0_12 = arith.constant 0 : index
    %c0_13 = arith.constant 0 : index
    %25 = vector.load %arg4[%c0_12, %c0_13] : memref<32x8xbf16, #tpu.memory_space<vmem>>, vector<32x8xbf16>
    %cst_14 = arith.constant dense<0.000000e+00> : vector<2x8xf32>
    %26 = tpu.matmul %24, %25, %cst_14 {dimension_numbers = #tpu.dot_dimension_numbers<[1], [0], [0], [1], [0, 0, 1, 1], [], []>} : vector<2x32xbf16>, vector<32x8xbf16>, vector<2x8xf32> -> vector<2x8xf32>
    %27 = vector.extract_strided_slice %0 {offsets = [2, 0], sizes = [1, 8], strides = [1, 1]} : vector<8x784xf32> to vector<1x8xf32>
    %28 = vector.broadcast %27 : vector<1x8xf32> to vector<2x8xf32>
    %29 = arith.addf %26, %28 : vector<2x8xf32>
    %30 = arith.truncf %29 : vector<2x8xf32> to vector<2x8xbf16>
    %c0_15 = arith.constant 0 : index
    %c0_16 = arith.constant 0 : index
    %31 = vector.load %arg5[%c0_15, %c0_16] : memref<8x32xbf16, #tpu.memory_space<vmem>>, vector<8x32xbf16>
    %cst_17 = arith.constant dense<0.000000e+00> : vector<2x32xf32>
    %32 = tpu.matmul %30, %31, %cst_17 {dimension_numbers = #tpu.dot_dimension_numbers<[1], [0], [0], [1], [0, 0, 1, 1], [], []>} : vector<2x8xbf16>, vector<8x32xbf16>, vector<2x32xf32> -> vector<2x32xf32>
    %33 = vector.extract_strided_slice %0 {offsets = [3, 0], sizes = [1, 32], strides = [1, 1]} : vector<8x784xf32> to vector<1x32xf32>
    %34 = vector.broadcast %33 : vector<1x32xf32> to vector<2x32xf32>
    %35 = arith.addf %32, %34 : vector<2x32xf32>
    %cst_18 = arith.constant 0.000000e+00 : f32
    %36 = vector.broadcast %cst_18 : f32 to vector<2x32xf32>
    %37 = arith.cmpf oge, %35, %36 : vector<2x32xf32>
    %cst_19 = arith.constant 0.00999999977 : f32
    %38 = vector.broadcast %cst_19 : f32 to vector<2x32xf32>
    %39 = arith.mulf %38, %35 : vector<2x32xf32>
    %40 = arith.select %37, %35, %39 : vector<2x32xi1>, vector<2x32xf32>
    %41 = arith.truncf %40 : vector<2x32xf32> to vector<2x32xbf16>
    %c0_20 = arith.constant 0 : index
    %c0_21 = arith.constant 0 : index
    %42 = vector.load %arg6[%c0_20, %c0_21] : memref<32x32xbf16, #tpu.memory_space<vmem>>, vector<32x32xbf16>
    %cst_22 = arith.constant dense<0.000000e+00> : vector<2x32xf32>
    %43 = tpu.matmul %41, %42, %cst_22 {dimension_numbers = #tpu.dot_dimension_numbers<[1], [0], [0], [1], [0, 0, 1, 1], [], []>} : vector<2x32xbf16>, vector<32x32xbf16>, vector<2x32xf32> -> vector<2x32xf32>
    %44 = vector.extract_strided_slice %0 {offsets = [4, 0], sizes = [1, 32], strides = [1, 1]} : vector<8x784xf32> to vector<1x32xf32>
    %45 = vector.broadcast %44 : vector<1x32xf32> to vector<2x32xf32>
    %46 = arith.addf %43, %45 : vector<2x32xf32>
    %cst_23 = arith.constant 0.000000e+00 : f32
    %47 = vector.broadcast %cst_23 : f32 to vector<2x32xf32>
    %48 = arith.cmpf oge, %46, %47 : vector<2x32xf32>
    %cst_24 = arith.constant 0.00999999977 : f32
    %49 = vector.broadcast %cst_24 : f32 to vector<2x32xf32>
    %50 = arith.mulf %49, %46 : vector<2x32xf32>
    %51 = arith.select %48, %46, %50 : vector<2x32xi1>, vector<2x32xf32>
    %52 = arith.truncf %51 : vector<2x32xf32> to vector<2x32xbf16>
    %c0_25 = arith.constant 0 : index
    %c0_26 = arith.constant 0 : index
    %53 = vector.load %arg7[%c0_25, %c0_26] : memref<32x784xbf16, #tpu.memory_space<vmem>>, vector<32x784xbf16>
    %cst_27 = arith.constant dense<0.000000e+00> : vector<2x784xf32>
    %54 = tpu.matmul %52, %53, %cst_27 {dimension_numbers = #tpu.dot_dimension_numbers<[1], [0], [0], [1], [0, 0, 1, 1], [], []>} : vector<2x32xbf16>, vector<32x784xbf16>, vector<2x784xf32> -> vector<2x784xf32>
    %55 = vector.extract_strided_slice %0 {offsets = [5, 0], sizes = [1, 784], strides = [1, 1]} : vector<8x784xf32> to vector<1x784xf32>
    %56 = vector.broadcast %55 : vector<1x784xf32> to vector<2x784xf32>
    %57 = arith.addf %54, %56 : vector<2x784xf32>
    %58 = arith.negf %57 : vector<2x784xf32>
    %59 = math.exp %58 : vector<2x784xf32>
    %cst_28 = arith.constant 1.000000e+00 : f32
    %60 = vector.broadcast %cst_28 : f32 to vector<2x784xf32>
    %61 = arith.addf %60, %59 : vector<2x784xf32>
    %62 = arith.divf %60, %61 : vector<2x784xf32>
    %c0_29 = arith.constant 0 : index
    %c0_30 = arith.constant 0 : index
    %63 = vector.load %arg9[%c0_29, %c0_30] : memref<2x784xf32, #tpu.memory_space<vmem>>, vector<2x784xf32>
    tpu.vector_store %arg9[%c0_29, %c0_30], %62 {strides = array<i32>} : memref<2x784xf32, #tpu.memory_space<vmem>>, vector<2x784xf32>,
    return
  }
  func.func @transform_0(%arg0: i32) -> (i32, i32) {
    %c0_i32 = arith.constant 0 : i32
    %c0_i32_0 = arith.constant 0 : i32
    return %arg0, %c0_i32 : i32, i32
  }
  func.func @transform_1(%arg0: i32) -> (i32, i32) {
    %c0_i32 = arith.constant 0 : i32
    %c0_i32_0 = arith.constant 0 : i32
    %c0_i32_1 = arith.constant 0 : i32
    return %c0_i32, %c0_i32_0 : i32, i32
  }
  func.func @transform_2(%arg0: i32) -> (i32, i32) {
    %c0_i32 = arith.constant 0 : i32
    %c0_i32_0 = arith.constant 0 : i32
    %c0_i32_1 = arith.constant 0 : i32
    return %c0_i32, %c0_i32_0 : i32, i32
  }
  func.func @transform_3(%arg0: i32) -> (i32, i32) {
    %c0_i32 = arith.constant 0 : i32
    %c0_i32_0 = arith.constant 0 : i32
    %c0_i32_1 = arith.constant 0 : i32
    return %c0_i32, %c0_i32_0 : i32, i32
  }
  func.func @transform_4(%arg0: i32) -> (i32, i32) {
    %c0_i32 = arith.constant 0 : i32
    %c0_i32_0 = arith.constant 0 : i32
    %c0_i32_1 = arith.constant 0 : i32
    return %c0_i32, %c0_i32_0 : i32, i32
  }
  func.func @transform_5(%arg0: i32) -> (i32, i32) {
    %c0_i32 = arith.constant 0 : i32
    %c0_i32_0 = arith.constant 0 : i32
    %c0_i32_1 = arith.constant 0 : i32
    return %c0_i32, %c0_i32_0 : i32, i32
  }
  func.func @transform_6(%arg0: i32) -> (i32, i32) {
    %c0_i32 = arith.constant 0 : i32
    %c0_i32_0 = arith.constant 0 : i32
    %c0_i32_1 = arith.constant 0 : i32
    return %c0_i32, %c0_i32_0 : i32, i32
  }
  func.func @transform_7(%arg0: i32) -> (i32, i32) {
    %c0_i32 = arith.constant 0 : i32
    %c0_i32_0 = arith.constant 0 : i32
    %c0_i32_1 = arith.constant 0 : i32
    return %c0_i32, %c0_i32_0 : i32, i32
  }
  func.func @transform_8(%arg0: i32) -> (i32, i32) {
    %c0_i32 = arith.constant 0 : i32
    %c0_i32_0 = arith.constant 0 : i32
    return %arg0, %c0_i32 : i32, i32
  }
}

</mosaic_0001>

<bundles_post_ra>
// kernel: tpu_custom_call.1
= control target key start
LH: loop header
LB: loop body
LE: loop exit
PB: predicated region body
PF: predicated region fallthrough
CT: control target
= control target key end

     0   :  { %v46_v27 = vlaneseq  ;;  %v1639_v35 = vmov 1983009808   ;;  %v1640_v40 = vmov 0.0   ;;  %vm1641_vm0 = vmmov 0   ;;  %s1985_s0 = inlined_call_operand.vmem [shape: f32[2,784], index: 0, kind: input, shape index: {}]   ;;  %s1986_s1 = inlined_call_operand.vmem [shape: bf16[784,32], index: 1, kind: input, shape index: {}]   ;;  %s1987_s2 = inlined_call_operand.vmem [shape: bf16[32,32], index: 2, kind: input, shape index: {}]   ;;  %s1988_s3 = inlined_call_operand.vmem [shape: bf16[32,8], index: 3, kind: input, shape index: {}]   ;;  %s1989_s4 = inlined_call_operand.vmem [shape: bf16[8,32], index: 4, kind: input, shape index: {}]   ;;  %s1990_s5 = inlined_call_operand.vmem [shape: bf16[32,32], index: 5, kind: input, shape index: {}]   ;;  %s1991_s6 = inlined_call_operand.vmem [shape: bf16[32,784], index: 6, kind: input, shape index: {}]   ;;  %s1992_s7 = inlined_call_operand.vmem [shape: f32[8,784], index: 7, kind: input, shape index: {}]   ;;  %s1993_s8 = inlined_call_operand.hbm [shape: f32[2,784], index: 8, kind: output, shape index: {}]  }
   0x1   :  { %v1512_v0 = vld [vmem:[%s1986_s1 + $0x78] sm:$0xff]   ;;  %v1516_v4 = vld [vmem:[%s1986_s1 + $0x70] sm:$0xff]   ;;  %v1520_v8 = vld [vmem:[%s1986_s1 + $0x68] sm:$0xff]   ;;  %v44_v36 = vunpack.c.l.s4 %v1639_v35  ;;  %vm485_vm1 = vcmask 130048  }
   0x2   :  { %v1513_v1 = vld [vmem:[%s1986_s1 + $0x38] sm:$0xff]   ;;  %1381 = vmatprep.subr.bf16.mxu0 %v1512_v0  ;;  %v1517_v5 = vld [vmem:[%s1986_s1 + $0x30] sm:$0xff]   ;;  %v1521_v9 = vld [vmem:[%s1986_s1 + $0x28] sm:$0xff]   ;;  %v1782_v32 = vshrl.u32 %v46_v27, 7 }
   0x3   :  { %v1514_v2 = vld [vmem:[%s1986_s1 + $0xf8] sm:$0xff]   ;;  %1382 = vmatpush3.bf16.msra.mxu0 %v1513_v1  ;;  %v1518_v6 = vld [vmem:[%s1986_s1 + $0xf0] sm:$0xff]   ;;  %v1522_v10 = vld [vmem:[%s1986_s1 + $0xe8] sm:$0xff]   ;;  %v45_v38 = vunpack.c.0.s8 %v44_v36 }
   0x4   :  { %v1515_v3 = vld [vmem:[%s1986_s1 + $0xb8] sm:$0xff]   ;;  %1403 = vmatprep.subr.bf16.mxu1 %v1514_v2  ;;  %1383 = vmatprep.subr.bf16.mxu0 %v1516_v4  ;;  %v1519_v7 = vld [vmem:[%s1986_s1 + $0xb0] sm:$0xff]   ;;  %v1523_v11 = vld [vmem:[%s1986_s1 + $0xa8] sm:$0xff]  }
   0x5   :  { %1404 = vmatpush3.bf16.msra.mxu1 %v1515_v3  ;;  %v1524_v12 = vld [vmem:[%s1986_s1 + $0x60] sm:$0xff]   ;;  %v1528_v16 = vld [vmem:[%s1986_s1 + $0x58] sm:$0xff]   ;;  %v1532_v20 = vld [vmem:[%s1986_s1 + $0x50] sm:$0xff]   ;;  %v1795_v41 = vsub.s32 %v45_v38, %v1782_v32 }
   0x6   :  { %1405 = vmatprep.subr.bf16.mxu1 %v1518_v6  ;;  %v1525_v13 = vld [vmem:[%s1986_s1 + $0x20] sm:$0xff]   ;;  %v1529_v17 = vld [vmem:[%s1986_s1 + $0x18] sm:$0xff]   ;;  %v1533_v21 = vld [vmem:[%s1986_s1 + $0x10] sm:$0xff]  }
   0x7   :  { %1384 = vmatpush3.bf16.msra.mxu0 %v1517_v5  ;;  %v1526_v14 = vld [vmem:[%s1986_s1 + $0xe0] sm:$0xff]   ;;  %v1530_v18 = vld [vmem:[%s1986_s1 + $0xd8] sm:$0xff]   ;;  %v1534_v22 = vld [vmem:[%s1986_s1 + $0xd0] sm:$0xff]  }
   0x8   :  { %1385 = vmatprep.subr.bf16.mxu0 %v1520_v8  ;;  %v1527_v15 = vld [vmem:[%s1986_s1 + $0xa0] sm:$0xff]   ;;  %v1531_v19 = vld [vmem:[%s1986_s1 + $0x98] sm:$0xff]   ;;  %v1535_v23 = vld [vmem:[%s1986_s1 + $0x90] sm:$0xff]  }
   0x9   :  { %1406 = vmatpush3.bf16.msra.mxu1 %v1519_v7  ;;  %v1536_v24 = vld [vmem:[%s1986_s1 + $0x48] sm:$0xff]   ;;  %v1540_v29 = vld [vmem:[%s1986_s1 + $0x40] sm:$0xff]   ;;  %v1544_v37 = vld [vmem:[%s1986_s1 + $0x178] sm:$0xff]  }
   0xa   :  { %1407 = vmatprep.subr.bf16.mxu1 %v1522_v10  ;;  %v1537_v25 = vld [vmem:[%s1986_s1 + $0x8] sm:$0xff]   ;;  %v1541_v30 = vld [vmem:[%s1986_s1] sm:$0xff]   ;;  %v1546_v50 = vld [vmem:[%s1986_s1 + $0x138] sm:$0xff]  }
   0xb   :  { %1386 = vmatpush3.bf16.msra.mxu0 %v1521_v9  ;;  %v1538_v26 = vld [vmem:[%s1986_s1 + $0xc8] sm:$0xff]   ;;  %v1542_v31 = vld [vmem:[%s1986_s1 + $0xc0] sm:$0xff]   ;;  %v1547_v51 = vld [vmem:[%s1986_s1 + $0x170] sm:$0xff]  }
   0xc   :  { %1387 = vmatprep.subr.bf16.mxu0 %v1524_v12  ;;  %v1539_v28 = vld [vmem:[%s1986_s1 + $0x88] sm:$0xff]   ;;  %v38_v33 = vld [vmem:[%s1985_s0] sm:$0xff]  ;;  %v1548_v52 = vld [vmem:[%s1986_s1 + $0x130] sm:$0xff]  }
   0xd   :  { %1408 = vmatpush3.bf16.msra.mxu1 %v1523_v11  ;;  %v1543_v34 = vld [vmem:[%s1986_s1 + $0x80] sm:$0xff]   ;;  %v42_v39 = vcombine.high %v38_v33, %v38_v33  ;;  %v49_v42 = vrot.slane %v38_v33, %v1795_v41  ;;  %v1549_v53 = vld [vmem:[%s1986_s1 + $0x168] sm:$0xff]   ;;  %v1553_v63 = vld [vmem:[%s1986_s1 + $0x158] sm:$0xff]  }
   0xe   :  { %1409 = vmatprep.subr.bf16.mxu1 %v1526_v14  ;;  %v1550_v54 = vld [vmem:[%s1986_s1 + $0x128] sm:$0xff]   ;;  %v1551_v55 = vld [vmem:[%s1986_s1 + $0x160] sm:$0xff]   ;;  %v1554_v2 = vld [vmem:[%s1986_s1 + $0x118] sm:$0xff]  }
   0xf   :  { %1388 = vmatpush3.bf16.msra.mxu0 %v1525_v13  ;;  %v56_v43 = vrot.slane %v42_v39, %v1795_v41  ;;  %v57_v44 = vcombine.high %v49_v42, %v49_v42  ;;  %v82_v46 = vpack.c.bf16 %v49_v42, %v49_v42  ;;  %v1561_v56 = vld [vmem:[%s1986_s1 + $0x180] sm:$0xff]   ;;  %v39_v57 = vld [vmem:[%s1985_s0 + $0x8] sm:$0x3f]  ;;  %v1555_v3 = vld [vmem:[%s1986_s1 + $0x150] sm:$0xff]  }
  0x10   :  { %1389 = vmatprep.subr.bf16.mxu0 %v1528_v16  ;;  %v59_v58 = vcombine.high %v39_v57, %v39_v57  ;;  %v66_v59 = vrot.slane %v39_v57, %v1795_v41  ;;  %v1552_v60 = vld [vmem:[%s1986_s1 + $0x120] sm:$0xff]  }
  0x11   :  { %1410 = vmatpush3.bf16.msra.mxu1 %v1527_v15  ;;  %v58_v45 = vcombine.high %v56_v43, %v56_v43  ;;  %v84_v47 = vpack.c.bf16 %v56_v43, %v56_v43  ;;  %v83_v48 = vpack.c.bf16 %v57_v44, %v57_v44 }
  0x12   :  { %1411 = vmatprep.subr.bf16.mxu1 %v1530_v18  ;;  %v73_v61 = vrot.slane %v59_v58, %v1795_v41  ;;  %v74_v62 = vcombine.high %v66_v59, %v66_v59 }
  0x13   :  { %1390 = vmatpush3.bf16.msra.mxu0 %v1529_v17  ;;  %v85_v49 = vpack.c.bf16 %v58_v45, %v58_v45  ;;  %521 = vmatprep.mubr.bf16.mxu0 %v83_v48 }
  0x14   :  { %1391 = vmatprep.subr.bf16.mxu0 %v1532_v20  ;;  %v87_v0 = vpack.c.bf16 %v74_v62, %v74_v62  ;;  %v88_v1 = vpack.c.bf16 %v73_v61, %v73_v61 }
  0x15   :  { %1412 = vmatpush3.bf16.msra.mxu1 %v1531_v19  ;;  %561 = vmatprep.mubr.bf16.mxu1 %v85_v49 }
  0x16   :  { %1413 = vmatprep.subr.bf16.mxu1 %v1534_v22 }
  0x17   :  { %1392 = vmatpush3.bf16.msra.mxu0 %v1533_v21 }
  0x18   :  { %1393 = vmatprep.subr.bf16.mxu0 %v1536_v24 }
  0x19   :  { %1414 = vmatpush3.bf16.msra.mxu1 %v1535_v23 }
  0x1a   :  { %1415 = vmatprep.subr.bf16.mxu1 %v1538_v26 }
  0x1b   :  { %1394 = vmatpush3.bf16.msra.mxu0 %v1537_v25 }
  0x1c   :  { %1395 = vmatprep.subr.bf16.mxu0 %v1540_v29 }
  0x1d   :  { %1416 = vmatpush3.bf16.msra.mxu1 %v1539_v28 }
  0x1e   :  { %1417 = vmatprep.subr.bf16.mxu1 %v1542_v31 }
  0x1f   :  { %1396 = vmatpush3.bf16.msra.mxu0 %v1541_v30 }
  0x20   :  { %1425 = vmatprep.subr.bf16.mxu0 %v1544_v37 }
  0x21   :  { %1418 = vmatpush3.bf16.msra.mxu1 %v1543_v34 }
  0x22   :  { %1463 = vmatprep.subr.bf16.mxu1 %v1640_v40  ;;  %522 = vmatmul.mubr.bf16.vlgmr.msra.gmra.mxu0 %v82_v46 }
  0x23   :  { %1426 = vmatpush3.bf16.msra.mxu0 %v1546_v50  ;;  %601 = vmatprep.mubr.bf16.mxu0 %v87_v0 }
  0x24   :  { %562 = vmatmul.mubr.bf16.vlgmr.msra.gmra.mxu1 %v84_v47  ;;  %1427 = vmatprep.subr.bf16.mxu0 %v1547_v51 }
  0x25   :  { %1465 = vmatprep.mubr.msk.bf16.mxu1 %vm1641_vm0, %v1640_v40  ;;  %1464 = vmatpush3.bf16.msra.mxu1 %v1561_v56 }
  0x26   :  { %1469 = vmatprep.subr.bf16.mxu1 %v1640_v40 }
  0x27   :  { %1428 = vmatpush3.bf16.msra.mxu0 %v1548_v52 }
  0x28   :  { %1429 = vmatprep.subr.bf16.mxu0 %v1549_v53 }
  0x2b   :  { %1430 = vmatpush3.bf16.msra.mxu0 %v1550_v54 }
  0x2c   :  { %1431 = vmatprep.subr.bf16.mxu0 %v1551_v55  ;;  %1466 = vmatmul.mubr.msk.bf16.vlgmr.msra.gmra.mxu1 %vm485_vm1, %v88_v1 }
  0x2d   :  { %1473 = vmatprep.mubr.msk.bf16.mxu1 %vm1641_vm0, %v1640_v40 }
  0x2f   :  { %1432 = vmatpush3.bf16.msra.mxu0 %v1552_v60 }
  0x30   :  { %1433 = vmatprep.subr.bf16.mxu0 %v1553_v63 }
  0x31   :  { %13 = vsyncpa [#allocation3], 0  ;;  %v1556_v4 = vld [vmem:[%s1986_s1 + $0x110] sm:$0xff]   ;;  %v1557_v5 = vld [vmem:[%s1986_s1 + $0x148] sm:$0xff]   ;;  %v86_v9 = vpack.c.bf16 %v66_v59, %v66_v59  ;;  %v189_v24 = vsub.s32 0, %v1782_v32  ;;  %vm673_vm3 = vcmask 261120  }
  0x32   :  { %v1558_v6 = vld [vmem:[%s1986_s1 + $0x108] sm:$0xff]   ;;  %v1559_v7 = vld [vmem:[%s1986_s1 + $0x140] sm:$0xff]   ;;  %v659_v46 = vsub.s32 1, %v1782_v32  ;;  %vm794_vm5 = vcmask 1043456   ;;  %v727_v58 = vsub.s32 2, %v1782_v32  ;;  %vm790_vm6 = vcmask 64512  }
  0x33   :  { %1434 = vmatpush3.bf16.msra.mxu0 %v1554_v2  ;;  %v1560_v8 = vld [vmem:[%s1986_s1 + $0x100] sm:$0xff]   ;;  %v1563_v10 = vld [vmem:[%s1987_s2 + $0x8] sm:$0xff]   ;;  %vm1276_vm9 = vcmask 1041408   ;;  %vm1277_vm10 = vcmask 1043458   ;;  %vm1279_vm12 = vcmask 128004  }
  0x34   :  { %1435 = vmatprep.subr.bf16.mxu0 %v1555_v3  ;;  %1470 = vmatpush3.bf16.msra.mxu1 %v1563_v10  ;;  %v1564_v11 = vld [vmem:[%s1987_s2] sm:$0xff]   ;;  %v1565_v44 = vld [vmem:[%s1988_s3 + $0x8] sm:$0xff]   ;;  %vm1278_vm11 = vmor %vm1277_vm10, %vm1276_vm9 }
  0x35   :  { %1471 = vmatprep.subr.bf16.mxu1 %v1640_v40  ;;  %v1872_v25 = vld [vmem:[%s1992_s7] sm:$0xff]  ;;  %v1567_v2 = vld [vmem:[%s1990_s5 + $0x8] sm:$0xff]   ;;  %vm1280_vm13 = vmor %vm1279_vm12, %vm1278_vm11 }
  0x36   :  { %v190_v26 = vrot.slane %v1872_v25, %v189_v24  ;;  %v1566_v45 = vld [vmem:[%s1988_s3] sm:$0xff]   ;;  %v660_v47 = vrot.slane %v1872_v25, %v659_v46  ;;  %v728_v59 = vrot.slane %v1872_v25, %v727_v58  ;;  %v848_v24 = vsub.s32 4, %v1782_v32 }
  0x37   :  { %1436 = vmatpush3.bf16.msra.mxu0 %v1556_v4  ;;  %v785_v52 = vld [vmem:[%s1989_s4] sm:$0xf]  ;;  %v1569_v4 = vld [vmem:[%s1991_s6 + $0x38] ss:$28 sps:$4 sm:$0xff]  }
  0x38   :  { %1437 = vmatprep.subr.bf16.mxu0 %v1557_v5  ;;  %1472 = vmatpush3.bf16.msra.mxu1 %v1564_v11  ;;  %v796_v57 = vsel %vm794_vm5, %v785_v52, 0  ;;  %v1568_v3 = vld [vmem:[%s1990_s5] sm:$0xff]   ;;  %v1571_v5 = vld [vmem:[%s1991_s6 + $0x3c] ss:$28 sps:$4 sm:$0xff]  }
  0x39   :  { %1477 = vmatprep.subr.bf16.mxu1 %v1640_v40 }
  0x3b   :  { %1438 = vmatpush3.bf16.msra.mxu0 %v1558_v6  ;;  %v788_v6 = vsub.s32 3, %v1782_v32 }
  0x3c   :  { %1439 = vmatprep.subr.bf16.mxu0 %v1559_v7 }
  0x3d   :  { %v789_v7 = vrot.slane %v1872_v25, %v788_v6 }
  0x3f   :  { %1440 = vmatpush3.bf16.msra.mxu0 %v1560_v8 }
  0x40   :  { %1491 = vmatprep.subr.bf16.mxu0 %v1640_v40 }
  0x42   :  { %602 = vmatmul.mubr.bf16.vlgmr.msra.gmra.mxu0 %v86_v9 }
  0x43   :  { %1495 = vmatprep.mubr.msk.bf16.mxu0 %vm1641_vm0, %v1640_v40  ;;  %1492 = vmatpush3.bf16.msra.mxu0 %v1567_v2 }
  0x44   :  { %1493 = vmatprep.subr.bf16.mxu0 %v1640_v40 }
  0x47   :  { %1494 = vmatpush3.bf16.msra.mxu0 %v1568_v3 }
  0xe2   :  { %v1397_v12 = vpop.f32.mrf.mxu0 }
  0xe4   :  { %v1419_v13 = vpop.f32.mrf.mxu1  ;;  %v1398_v14 = vpop.f32.mrf.mxu0 }
  0xe5   :  { %v1399_v27 = vadd.f32 %v1398_v14, %v1397_v12 }
  0xe6   :  { %v1420_v15 = vpop.f32.mrf.mxu1  ;;  %v1400_v16 = vpop.f32.mrf.mxu0 }
  0xe7   :  { %v524_v28 = vadd.f32 %v1399_v27, %v190_v26  ;;  %v1421_v29 = vadd.f32 %v1420_v15, %v1419_v13  ;;  %v1574_v16 = vld [vmem:[%s1991_s6 + $0x44] ss:$28 sps:$4 sm:$0xff]   ;;  %v849_v26 = vrot.slane %v1872_v25, %v848_v24 }
  0xe8   :  { %v1422_v17 = vpop.f32.mrf.mxu1  ;;  %v1401_v18 = vpop.f32.mrf.mxu0  ;;  %1081 = vmatprep.subr.bf16.mxu0 %v1574_v16 }
  0xe9   :  { %v564_v33 = vadd.f32 %v1421_v29, %v524_v28  ;;  %v1572_v17 = vld [vmem:[%s1991_s6 + $0x40] ss:$28 sps:$4 sm:$0xff]  }
  0xea   :  { %v1423_v19 = vpop.f32.mrf.mxu1  ;;  %v1577_v18 = vld [vmem:[%s1991_s6 + $0x4] ss:$28 sps:$4 sm:$0xff]  }
  0xeb   :  { %v1580_v19 = vld [vmem:[%s1991_s6 + $0xc] ss:$28 sps:$4 sm:$0xff]  }
  0xec   :  { %v643_v20 = vpop.f32.mrf.mxu1 }
  0xee   :  { %v1467_v21 = vpop.f32.mrf.mxu1 }
  0xef   :  { %v1578_v21 = vld [vmem:[%s1991_s6 + $0x8] ss:$28 sps:$4 sm:$0xff]  }
  0xf0   :  { %v646_v22 = vpop.f32.mrf.mxu1 }
  0xf1   :  { %v1583_v22 = vld [vmem:[%s1991_s6 + $0x4c] ss:$28 sps:$4 sm:$0xff]  }
  0xf2   :  { %v1468_v23 = vpop.f32.mrf.mxu1 }
  0xf3   :  { %v1642_v23 = vmov 0  }
 0x102   :  { %v1441_v30 = vpop.f32.mrf.mxu0 }
 0x104   :  { %v1442_v31 = vpop.f32.mrf.mxu0 }
 0x105   :  { %v1443_v34 = vadd.f32 %v1442_v31, %v1441_v30 }
 0x106   :  { %v1444_v35 = vpop.f32.mrf.mxu0 }
 0x107   :  { %v604_v36 = vadd.f32 %v1443_v34, %v564_v33  ;;  %v1581_v34 = vld [vmem:[%s1991_s6 + $0x48] ss:$28 sps:$4 sm:$0xff]   ;;  %v1584_v35 = vld [vmem:[%s1991_s6 + $0x50] ss:$28 sps:$4 sm:$0xff]  }
 0x108   :  { %v1445_v37 = vpop.f32.mrf.mxu0 }
 0x109   :  { %v644_v38 = vadd.f32 %v643_v20, %v604_v36  ;;  %v1575_v20 = vld [vmem:[%s1991_s6] ss:$28 sps:$4 sm:$0xff]  }
 0x10b   :  { %vm649_vm2 = vcmp.ge.f32.partialorder %v644_v38, 0.0  ;;  %v650_v39 = vmul.f32 0.01, %v644_v38 }
 0x10d   :  { %v651_v42 = vsel %vm649_vm2, %v644_v38, %v650_v39  ;;  %v1587_v38 = vld [vmem:[%s1991_s6 + $0x14] ss:$28 sps:$4 sm:$0xff]  }
 0x10e   :  { %v652_v43 = vpack.c.bf16 %v651_v42, %v651_v42  ;;  %v1585_v39 = vld [vmem:[%s1991_s6 + $0x10] ss:$28 sps:$4 sm:$0xff]   ;;  %v1588_v42 = vld [vmem:[%s1991_s6 + $0x18] ss:$28 sps:$4 sm:$0xff]  }
 0x110   :  { %1474 = vmatmul.mubr.msk.bf16.vlgmr.msra.gmra.mxu1 %vm673_vm3, %v652_v43  ;;  %v927_v43 = vsub.s32 5, %v1782_v32 }
 0x111   :  { %1481 = vmatprep.mubr.msk.bf16.mxu1 %vm1641_vm0, %v1640_v40  ;;  %1478 = vmatpush3.bf16.msra.mxu1 %v1565_v44  ;;  %v33_v44 = vld [vmem:[%s1992_s7 + $0x10] sm:$0xff] }
 0x112   :  { %1479 = vmatprep.subr.bf16.mxu1 %v1640_v40  ;;  %v928_v46 = vrot.slane %v1872_v25, %v927_v43 }
 0x115   :  { %1480 = vmatpush3.bf16.msra.mxu1 %v1566_v45  ;;  %v32_v45 = vld [vmem:[%s1992_s7 + $0x8] sm:$0xff] }
 0x116   :  { %1485 = vmatprep.subr.bf16.mxu1 %v1640_v40 }
 0x1d0   :  { %v711_v48 = vpop.f32.mrf.mxu1 }
 0x1d1   :  { %v712_v49 = vadd.f32 %v711_v48, %v660_v47  ;;  %v936_v47 = vrot.slane %v33_v44, %v927_v43  ;;  %v932_v48 = vrot.slane %v32_v45, %v927_v43 }
 0x1d2   :  { %v1475_v50 = vpop.f32.mrf.mxu1 }
 0x1d3   :  { %vm717_vm4 = vcmp.ge.f32.partialorder %v712_v49, 0.0  ;;  %v718_v51 = vmul.f32 0.01, %v712_v49 }
 0x1d4   :  { %v714_v53 = vpop.f32.mrf.mxu1 }
 0x1d5   :  { %v719_v54 = vsel %vm717_vm4, %v712_v49, %v718_v51  ;;  %v35_v53 = vld [vmem:[%s1992_s7 + $0x20] sm:$0xff] }
 0x1d6   :  { %v720_v55 = vpack.c.bf16 %v719_v54, %v719_v54  ;;  %v1476_v56 = vpop.f32.mrf.mxu1 }
 0x1d7   :  { %v37_v56 = vld [vmem:[%s1992_s7 + $0x30] sm:$0xff] }
 0x1d8   :  { %1482 = vmatmul.mubr.msk.bf16.vlgmr.msra.gmra.mxu1 %vm673_vm3, %v720_v55  ;;  %v952_v2 = vrot.slane %v37_v56, %v927_v43 }
 0x1d9   :  { %1486 = vmatpush3.bf16.msra.mxu1 %v796_v57  ;;  %1487 = vmatprep.mubr.msk.bf16.mxu1 %vm1641_vm0, %v1640_v40 }
 0x1da   :  { %1040 = vmatprep.subr.bf16.mxu1 %v1571_v5 }
 0x298   :  { %v778_v60 = vpop.f32.mrf.mxu1 }
 0x299   :  { %v779_v61 = vadd.f32 %v778_v60, %v728_v59 }
 0x29a   :  { %v1483_v62 = vpop.f32.mrf.mxu1 }
 0x29b   :  { %v784_v63 = vpack.c.bf16 %v779_v61, %v779_v61  ;;  %v944_v62 = vrot.slane %v35_v53, %v927_v43 }
 0x29c   :  { %v781_v0 = vpop.f32.mrf.mxu1 }
 0x29d   :  { %1488 = vmatmul.mubr.msk.bf16.vlgmr.msra.gmra.mxu1 %vm790_vm6, %v784_v63  ;;  %v36_v63 = vld [vmem:[%s1992_s7 + $0x28] sm:$0xff] }
 0x29e   :  { %v1484_v1 = vpop.f32.mrf.mxu1  ;;  %1041 = vmatpush1.bf16.msra.mxu1 %v1569_v4  ;;  %1060 = vmatprep.mubr.bf16.mxu1 %v1642_v23  ;;  %v948_v5 = vrot.slane %v36_v63, %v927_v43 }
 0x29f   :  { %1042 = vmatprep.subr.bf16.mxu1 %v1577_v18 }
 0x2a2   :  { %1043 = vmatpush1.bf16.msra.mxu1 %v1575_v20 }
 0x2a3   :  { %1122 = vmatprep.subr.bf16.mxu1 %v1583_v22 }
 0x35d   :  { %v832_v8 = vpop.f32.mrf.mxu1 }
 0x35e   :  { %v833_v9 = vadd.f32 %v832_v8, %v789_v7 }
 0x35f   :  { %v1489_v10 = vpop.f32.mrf.mxu1 }
 0x360   :  { %vm838_vm7 = vcmp.ge.f32.partialorder %v833_v9, 0.0  ;;  %v839_v11 = vmul.f32 0.01, %v833_v9 }
 0x361   :  { %v835_v12 = vpop.f32.mrf.mxu1 }
 0x362   :  { %v840_v13 = vsel %vm838_vm7, %v833_v9, %v839_v11 }
 0x363   :  { %v841_v14 = vpack.c.bf16 %v840_v13, %v840_v13  ;;  %v1490_v15 = vpop.f32.mrf.mxu1 }
 0x365   :  { %1496 = vmatmul.mubr.msk.bf16.vlgmr.msra.gmra.mxu0 %vm673_vm3, %v841_v14 }
 0x366   :  { %1082 = vmatpush1.bf16.msra.mxu0 %v1572_v17  ;;  %1101 = vmatprep.mubr.bf16.mxu0 %v1642_v23 }
 0x367   :  { %1083 = vmatprep.subr.bf16.mxu0 %v1580_v19 }
 0x36a   :  { %1084 = vmatpush1.bf16.msra.mxu0 %v1578_v21 }
 0x36b   :  { %1499 = vmatprep.subr.bf16.mxu0 %v1640_v40 }
 0x425   :  { %v899_v27 = vpop.f32.mrf.mxu0 }
 0x426   :  { %v900_v28 = vadd.f32 %v899_v27, %v849_v26 }
 0x427   :  { %v1497_v29 = vpop.f32.mrf.mxu0 }
 0x428   :  { %vm905_vm8 = vcmp.ge.f32.partialorder %v900_v28, 0.0  ;;  %v906_v30 = vmul.f32 0.01, %v900_v28 }
 0x429   :  { %v902_v31 = vpop.f32.mrf.mxu0 }
 0x42a   :  { %v907_v33 = vsel %vm905_vm8, %v900_v28, %v906_v30 }
 0x42b   :  { %v908_v36 = vpack.c.bf16 %v907_v33, %v907_v33  ;;  %v1498_v37 = vpop.f32.mrf.mxu0 }
 0x42d   :  { %1370 = vmatmul.mubr.msk.bf16.vlgmr.msra.gmra.mxu1 %vm673_vm3, %v908_v36  ;;  %1371 = vmatmul.mubr.msk.bf16.vlgmr.msra.gmra.mxu0 %vm673_vm3, %v908_v36 }
 0x42e   :  { %1123 = vmatpush1.bf16.msra.mxu1 %v1581_v34  ;;  %1500 = vmatpush3.bf16.msra.mxu0 %v1584_v35 }
 0x42f   :  { %1124 = vmatprep.subr.bf16.mxu1 %v1587_v38  ;;  %1501 = vmatprep.subr.bf16.mxu0 %v1640_v40 }
 0x430   :  { %1142 = vmatprep.mubr.bf16.mxu1 %v1642_v23  ;;  %1503 = vmatprep.mubr.msk.bf16.mxu0 %vm1641_vm0, %v1640_v40  ;;  %v34_v40 = vld [vmem:[%s1992_s7 + $0x18] sm:$0xff]  ;;  %s1643_s7 = smov [#allocation2]  }
 0x431   :  { %v940_v49 = vrot.slane %v34_v40, %v927_v43  ;;  %s1288_s17 = sshll.u32 %s1643_s7, 4  ;;  %s1289_s17 = int_to_ptr.vmem [resolvable:$true] %s1288_s17 }
 0x432   :  { %1125 = vmatpush1.bf16.msra.mxu1 %v1585_v39  ;;  %1502 = vmatpush3.bf16.msra.mxu0 %v1588_v42  ;;  %s1617_s18 = scalar_lea.vmem %s1289_s17, 224  ;;  %p1622_p1 = scmp.lt.s32.totalorder %s1289_s17, %s1289_s17 }
 0x433   :  { %p1618_p0 = scmp.ne.s32.totalorder %s1289_s17, %s1617_s18  ;;  %p1623_p2 = scmp.lt.s32.totalorder %s1617_s18, %s1617_s18 }
 0x435   :  { %1372 = vmatmul.mubr.msk.bf16.vlgmr.msra.gmra.mxu1 %vm673_vm3, %v908_v36  ;;  %1504 = vmatmul.mubr.msk.bf16.vlgmr.msra.gmra.mxu0 %vm673_vm3, %v908_v36  ;;  %p1624_p3 = por %p1623_p2, %p1622_p1 }
 0x437   :  { %p1625_p4 = pnand %p1624_p3, %p1618_p0 }
 0x4ed   :  { %v1062_v50 = vpop.f32.mrf.mxu1  ;;  %v1103_v51 = vpop.f32.mrf.mxu0 }
 0x4ee   :  { %v1063_v32 = vadd.f32 %v1062_v50, %v928_v46  ;;  %v1104_v52 = vadd.f32 %v1103_v51, %v936_v47 }
 0x4ef   :  { %v1064_v54 = vpop.f32.mrf.mxu1  ;;  %v1105_v55 = vpop.f32.mrf.mxu0 }
 0x4f0   :  { %v1374_v57 = vmul.f32 -1.442695, %v1063_v32  ;;  %v1376_v58 = vmul.f32 -1.442695, %v1104_v52  ;;  %v1065_v25 = vadd.f32 %v1064_v54, %v932_v48  ;;  %v1106_v59 = vadd.f32 %v1105_v55, %v940_v49 }
 0x4f1   :  { %v1066_v60 = vpop.f32.mrf.mxu1  ;;  %v1107_v61 = vpop.f32.mrf.mxu0 }
 0x4f2   :  { %1589 = vpow2.f32 %v1374_v57  ;;  %v1375_v0 = vmul.f32 -1.442695, %v1065_v25  ;;  %v1377_v1 = vmul.f32 -1.442695, %v1106_v59 }
 0x4f3   :  { %1591 = vpow2.f32 %v1376_v58  ;;  %v1067_v3 = vpop.f32.mrf.mxu1  ;;  %v1108_v4 = vpop.f32.mrf.mxu0 }
 0x4f4   :  { %1593 = vpow2.f32 %v1375_v0 }
 0x4f5   :  { %1595 = vpow2.f32 %v1377_v1  ;;  %v1144_v6 = vpop.f32.mrf.mxu1  ;;  %v1185_v7 = vpop.f32.mrf.mxu0 }
 0x4f6   :  { %v1145_v8 = vadd.f32 %v1144_v6, %v944_v62  ;;  %v1186_v9 = vadd.f32 %v1185_v7, %v952_v2 }
 0x4f7   :  { %v1146_v10 = vpop.f32.mrf.mxu1  ;;  %v1505_v11 = vpop.f32.mrf.mxu0 }
 0x4f8   :  { %v1378_v12 = vmul.f32 -1.442695, %v1145_v8  ;;  %v1380_v13 = vmul.f32 -1.442695, %v1186_v9  ;;  %v1147_v14 = vadd.f32 %v1146_v10, %v948_v5 }
 0x4f9   :  { %v1148_v15 = vpop.f32.mrf.mxu1  ;;  %v1188_v16 = vpop.f32.mrf.mxu0 }
 0x4fa   :  { %1597 = vpow2.f32 %v1378_v12  ;;  %v1379_v17 = vmul.f32 -1.442695, %v1147_v14 }
 0x4fb   :  { %1599 = vpow2.f32 %v1380_v13  ;;  %v1149_v18 = vpop.f32.mrf.mxu1  ;;  %v1506_v19 = vpop.f32.mrf.mxu0 }
 0x4fc   :  { %1601 = vpow2.f32 %v1379_v17 }
 0x4ff   :  { %v1590_v20 = vpop.eup %1589 }
 0x500   :  { %v1592_v21 = vpop.eup %1591  ;;  %v1212_v22 = vadd.f32 1.0, %v1590_v20 }
 0x501   :  { %v1594_v23 = vpop.eup %1593  ;;  %v1214_v24 = vadd.f32 1.0, %v1592_v21 }
 0x502   :  { %v1596_v26 = vpop.eup %1595  ;;  %1603 = vrcp.f32 %v1212_v22  ;;  %v1213_v27 = vadd.f32 1.0, %v1594_v23 }
 0x503   :  { %1605 = vrcp.f32 %v1214_v24  ;;  %v1215_v28 = vadd.f32 1.0, %v1596_v26 }
 0x504   :  { %1607 = vrcp.f32 %v1213_v27 }
 0x505   :  { %1609 = vrcp.f32 %v1215_v28 }
 0x507   :  { %v1598_v29 = vpop.eup %1597 }
 0x508   :  { %v1600_v30 = vpop.eup %1599  ;;  %v1216_v31 = vadd.f32 1.0, %v1598_v29 }
 0x509   :  { %v1602_v33 = vpop.eup %1601  ;;  %v1218_v34 = vadd.f32 1.0, %v1600_v30 }
 0x50a   :  { %1611 = vrcp.f32 %v1216_v31  ;;  %v1217_v35 = vadd.f32 1.0, %v1602_v33 }
 0x50b   :  { %1613 = vrcp.f32 %v1218_v34 }
 0x50c   :  { %1615 = vrcp.f32 %v1217_v35 }
 0x50f   :  { %v1604_v36 = vpop.eup %1603 }
 0x510   :  { %v1606_v37 = vpop.eup %1605 }
 0x511   :  { %v1608_v38 = vpop.eup %1607 }
 0x512   :  { %v1610_v39 = vpop.eup %1609  ;;  %v1240_v42 = vcombine.low %v1604_v36, %v1608_v38 }
 0x513   :  { %v1241_v43 = vcombine.low %v1606_v37, %v1610_v39 }
 0x514   :  { %v1248_v44 = vrot.slane %v1240_v42, %v1795_v41 }
 0x515   :  { %v1255_v45 = vrot.slane %v1241_v43, %v1795_v41 }
 0x517   :  { %v1612_v40 = vpop.eup %1611  ;;  %v1256_v46 = vcombine.low %v1248_v44, %v1255_v45 }
 0x518   :  { %v1614_v47 = vpop.eup %1613 }
 0x519   :  { %v1616_v48 = vpop.eup %1615  ;;  %1275 = vst [vmem:[#allocation2] sm:$0xff] %v1256_v46  ;;  %v1271_v51 = vrot.slane %v1614_v47, %v1795_v41 }
 0x51a   :  { %v1257_v49 = vcombine.low %v1612_v40, %v1616_v48 }
 0x51c   :  { %v1264_v50 = vrot.slane %v1257_v49, %v1795_v41 }
 0x51e   :  { %v1272_v32 = vcombine.low %v1264_v50, %v1271_v51 }
 0x520   :  { %1281 = vst.msk [vmem:[#allocation2 + $0x8] sm:$0x3f] %vm1280_vm13, %v1272_v32 }
 0x521   :  { %1628 = shalt.err (!%p1625_p4)
}
 0x522   :  { %1291 = dma.vmem_to_hbm [thread:$0]  %s1289_s17, 224, %s1993_s8, [#allocation3]  }
 0x523   :  { %1637 = dma.done.wait [#allocation3], 224  }
 0x524   :  { %1638 = vsyncadd [#allocation3], 4294967072 }
 0x525   :  { %1295 = vsyncpa [#allocation3], 1 }

</bundles_post_ra>
